<compile_context>
chip_gen: v7x
topology: tpu7x:2x2x1
jax: 0.10.0
libtpu: 0.0.40
codegen_flags: <defaults>
</compile_context>

<pallas_src>
import math

import jax
import jax.numpy as jnp
from jax.experimental import pallas as pl
from jax.experimental.pallas import tpu as pltpu


# ----------------------------------------------------------------------------- kernel
def attention_fusion_kernel(x_ref, qeff_ref, wvo_ref, bvo_ref, out_ref):
    """One batch tile.

    x_ref    : (TB, S, E)  input block (streamed; any float dtype)
    qeff_ref : (1, E)      scale * (q @ Wq^T + bq) @ Wk   (query folded through K proj), f32
    wvo_ref  : (E, E)      (Wo @ Wv)^T                    (V + output proj fused, pre-transposed)
    bvo_ref  : (1, E)      bv @ Wo^T + bo                 (fused bias)
    out_ref  : (TB, E)     lane-dense output block
    """
    x = x_ref[...].astype(jnp.float32)                 # upcast once (v5e VPU has no bf16)
    q_eff = qeff_ref[...]                              # (1, E), pre-scaled f32

    # scores[b, s] = <x[b, s, :], q_eff>  -- VPU multiply + lane-axis (XLU) reduce, (TB, S).
    s = jnp.sum(x * q_eff[None, :, :], axis=-1)        # (TB, S), no singleton query dim

    # Numerically stable softmax over the key axis, kept 2-D (full vreg utilization).
    m = jnp.max(s, axis=-1, keepdims=True)             # (TB, 1)
    p = jnp.exp(s - m)                                  # (TB, S)
    l = jnp.sum(p, axis=-1, keepdims=True)              # (TB, 1)

    # Context: broadcast-multiply + S-axis (sublane) reduce, reusing x while it is in vregs.
    ctx = jnp.sum(p[:, :, None] * x, axis=1)            # (TB, E)
    ctx = ctx / l                                        # exact divide; one per row, negligible

    # Fused V + output projection: the single real MXU matmul of the kernel.
    out = jnp.dot(ctx, wvo_ref[...],
                  preferred_element_type=jnp.float32) + bvo_ref[...]
    out_ref[...] = out.astype(out_ref.dtype)
    # NOTE: for very long S one would add a second ("arbitrary") grid axis over the
    # sequence with an online-softmax accumulator; unnecessary at these sizes.


# ----------------------------------------------------------------------------- wrapper
def _fold_params(params):
    """Pre-fold the MHA projections into 3 small grid-invariant operands (host-side JAX)."""
    q_param, wq, wk, wv, bq, bk, bv, wo, bo = params
    E = q_param.shape[-1]
    scale = 1.0 / math.sqrt(E)                       # single head -> head_dim == E
    q_proj = q_param @ wq.T + bq                     # (1, E)
    q_eff = (scale * (q_proj @ wk)).astype(jnp.float32)   # (1, E); bk term cancels in softmax
    wvo_T = (wo @ wv).T.astype(jnp.float32)          # (E, E), pre-transposed (no in-kernel .T)
    b_fused = (bv @ wo.T + bo).astype(jnp.float32)   # (1, E)
    return q_eff, wvo_T, b_fused


def _choose_batch_tile(B, S, E, x_itemsize=4, *, vmem_budget_bytes=40 << 20):
    """Largest legal batch tile with explicit accounting of ALL pipeline buffers:
    2x x-block + 2x out-block (double-buffered) + 2x resident weight/bias buffers.
    The 40 MiB budget (plus headroom to the 48 MiB vmem_limit below) is safe on
    v7x (64 MiB physical per-TC) as well as v5e / v6e (128 MiB physical)."""
    per_row = 2 * S * E * x_itemsize + 2 * E * 4     # x + out, both double-buffered
    resident = 2 * E * E * 4 + 4 * E * 4             # (Wo@Wv)^T, q_eff, bias (double-buffered)
    avail = max(vmem_budget_bytes - resident, per_row)
    rows = max(1, avail // per_row)

    if rows >= B:
        if B >= 16:
            # Keep >= 2 grid blocks so the "parallel" axis can split across v7x's two TCs.
            return max(8, (B // 2 // 8) * 8)
        return B                                     # single block (block dim == array dim)

    tb = (rows // 8) * 8                             # multiple of 8 -> legal (TB, E) out block
    if tb == 0:
        tb = min(B, 8)
    return tb


def attention_fusion(x, params, *, batch_tile=None):
    """x: (B, S, E) float32/bfloat16 -> (B, E) attention output for the learned query."""
    B, S, E = x.shape
    q_eff, wvo_T, b_fused = _fold_params(params)

    x_itemsize = jnp.dtype(x.dtype).itemsize
    TB = batch_tile if batch_tile is not None else _choose_batch_tile(B, S, E, x_itemsize)
    n_blocks = pl.cdiv(B, TB)
    # No host-side padding: non-divisible batches use Pallas masked edge blocks.  Rows past B
    # in the final block hold undefined data, but every row is independent and those rows are
    # never written to the (B, E) output.

    cost = pl.CostEstimate(
        flops=4 * B * S * E + 2 * B * E * E,
        transcendentals=B * S,
        bytes_accessed=B * S * E * x_itemsize + B * E * x_itemsize + (E * E + 3 * E) * 4,
    )

    return pl.pallas_call(
        attention_fusion_kernel,
        out_shape=jax.ShapeDtypeStruct((B, E), x.dtype),
        grid_spec=pltpu.PrefetchScalarGridSpec(
            num_scalar_prefetch=0,
            grid=(n_blocks,),
            in_specs=[
                pl.BlockSpec((TB, S, E), lambda i: (i, 0, 0)),   # x: streamed over batch
                pl.BlockSpec((1, E), lambda i: (0, 0)),          # q_eff: grid-invariant
                pl.BlockSpec((E, E), lambda i: (0, 0)),          # (Wo@Wv)^T: grid-invariant
                pl.BlockSpec((1, E), lambda i: (0, 0)),          # fused bias: grid-invariant
            ],
            out_specs=pl.BlockSpec((TB, E), lambda i: (i, 0)),   # lane-dense (TB, E) store
        ),
        compiler_params=pltpu.CompilerParams(
            dimension_semantics=("parallel",),                   # megacore/2-TC sharding on v7x
            vmem_limit_bytes=48 << 20,                           # explicit; < v7x 64 MiB physical
        ),
        cost_estimate=cost,
    )(x, q_eff, wvo_T, b_fused)


# ----------------------------------------------------------------------------- init & reference
def init_params(key, embed_dim):
    """Deterministic init mirroring nn.MultiheadAttention's parameter shapes."""
    k_query, k_inproj, k_outw = jax.random.split(key, 3)
    q_param = jax.random.normal(k_query, (1, embed_dim), jnp.float32)      # torch.randn(1, E)
    limit_in = math.sqrt(6.0 / (embed_dim + 3 * embed_dim))                # xavier_uniform
    in_proj = jax.random.uniform(k_inproj, (3 * embed_dim, embed_dim),
                                 jnp.float32, -limit_in, limit_in)
    wq = in_proj[0 * embed_dim:1 * embed_dim]
    wk = in_proj[1 * embed_dim:2 * embed_dim]
    wv = in_proj[2 * embed_dim:3 * embed_dim]
    bq = jnp.zeros((1, embed_dim), jnp.float32)
    bk = jnp.zeros((1, embed_dim), jnp.float32)
    bv = jnp.zeros((1, embed_dim), jnp.float32)
    limit_out = 1.0 / math.sqrt(embed_dim)
    wo = jax.random.uniform(k_outw, (embed_dim, embed_dim),
                            jnp.float32, -limit_out, limit_out)
    bo = jnp.zeros((1, embed_dim), jnp.float32)
    return (q_param, wq, wk, wv, bq, bk, bv, wo, bo)


def attention_fusion_reference(x, params):
    """Pure-JAX reference reproducing nn.MultiheadAttention (1 head) forward, unfused."""
    q_param, wq, wk, wv, bq, bk, bv, wo, bo = params
    E = x.shape[-1]
    q = q_param @ wq.T + bq                                   # (1, E)
    k = jnp.einsum('bse,fe->bsf', x, wk) + bk                 # (B, S, E)
    v = jnp.einsum('bse,fe->bsf', x, wv) + bv                 # (B, S, E)
    scores = jnp.einsum('qe,bse->bqs', q, k) / math.sqrt(E)   # (B, 1, S)
    p = jax.nn.softmax(scores, axis=-1)
    ctx = jnp.einsum('bqs,bse->bqe', p, v)                    # (B, 1, E)
    out = jnp.einsum('bqe,fe->bqf', ctx, wo) + bo             # (B, 1, E)
    return out[:, 0, :]


# ----------------------------------------------------------------------------- main
if __name__ == "__main__":
    key = jax.random.PRNGKey(0)
    k_x1, k_p1, k_x2, k_p2 = jax.random.split(key, 4)

    # Small case matching the module's natural shapes (single grid block, TB == B).
    B, S, E = 2, 8, 32
    x = jax.random.normal(k_x1, (B, S, E), jnp.float32)
    params = init_params(k_p1, E)
    out = jax.block_until_ready(attention_fusion(x, params))
    ref = attention_fusion_reference(x, params)
    assert out.shape == (B, E)
    assert jnp.allclose(out, ref, atol=1e-4, rtol=1e-4), "mismatch vs reference (case 1)"

    # Non-divisible batch: exercises the tiled grid with a masked edge block (no host pad).
    B2, S2, E2 = 20, 8, 32
    x2 = jax.random.normal(k_x2, (B2, S2, E2), jnp.float32)
    params2 = init_params(k_p2, E2)
    out2 = jax.block_until_ready(attention_fusion(x2, params2, batch_tile=8))
    ref2 = attention_fusion_reference(x2, params2)
    assert out2.shape == (B2, E2)
    assert jnp.allclose(out2, ref2, atol=1e-4, rtol=1e-4), "mismatch vs reference (case 2)"

    print("KERNEL_OK")
</pallas_src>

<mosaic_0001>
module attributes {stable_mosaic.version = 11 : i64} {
  func.func @attention_fusion_kernel(%arg0: i32, %arg1: memref<2x8x32xf32, #tpu.memory_space<vmem>>, %arg2: memref<1x32xf32, #tpu.memory_space<vmem>>, %arg3: memref<32x32xf32, #tpu.memory_space<vmem>>, %arg4: memref<1x32xf32, #tpu.memory_space<vmem>>, %arg5: memref<2x32xf32, #tpu.memory_space<vmem>>) attributes {dimension_semantics = [#tpu.dimension_semantics<parallel>], iteration_bounds = array<i64: 1>, scalar_prefetch = 0 : i64, scratch_operands = 0 : i64, tpu.core_type = #tpu.core_type<tc>, window_params = [{transform_indices = @transform_0, window_bounds = array<i64: 2, 8, 32>}, {pipeline_mode = #tpu.pipeline_mode<synchronous>, transform_indices = @transform_1, window_bounds = array<i64: 1, 32>}, {pipeline_mode = #tpu.pipeline_mode<synchronous>, transform_indices = @transform_2, window_bounds = array<i64: 32, 32>}, {pipeline_mode = #tpu.pipeline_mode<synchronous>, transform_indices = @transform_3, window_bounds = array<i64: 1, 32>}, {transform_indices = @transform_4, window_bounds = array<i64: 2, 32>}]} {
    %c0 = arith.constant 0 : index
    %c0_0 = arith.constant 0 : index
    %c0_1 = arith.constant 0 : index
    %0 = vector.load %arg1[%c0, %c0_0, %c0_1] : memref<2x8x32xf32, #tpu.memory_space<vmem>>, vector<2x8x32xf32>
    %c0_2 = arith.constant 0 : index
    %c0_3 = arith.constant 0 : index
    %1 = vector.load %arg2[%c0_2, %c0_3] : memref<1x32xf32, #tpu.memory_space<vmem>>, vector<1x32xf32>
    %2 = vector.shape_cast %1 : vector<1x32xf32> to vector<1x1x32xf32>
    %3 = vector.broadcast %2 : vector<1x1x32xf32> to vector<2x8x32xf32>
    %4 = arith.mulf %0, %3 : vector<2x8x32xf32>
    %cst = arith.constant dense<0.000000e+00> : vector<2x8xf32>
    %5 = vector.multi_reduction <add>, %4, %cst [2] : vector<2x8x32xf32> to vector<2x8xf32>
    %cst_4 = arith.constant dense<0xFF800000> : vector<2xf32>
    %6 = vector.multi_reduction <maximumf>, %5, %cst_4 [1] : vector<2x8xf32> to vector<2xf32>
    %7 = vector.shape_cast %6 : vector<2xf32> to vector<2x1xf32>
    %8 = vector.broadcast %7 : vector<2x1xf32> to vector<2x8xf32>
    %9 = arith.subf %5, %8 : vector<2x8xf32>
    %10 = math.exp %9 : vector<2x8xf32>
    %cst_5 = arith.constant dense<0.000000e+00> : vector<2xf32>
    %11 = vector.multi_reduction <add>, %10, %cst_5 [1] : vector<2x8xf32> to vector<2xf32>
    %12 = vector.shape_cast %11 : vector<2xf32> to vector<2x1xf32>
    %13 = vector.shape_cast %10 : vector<2x8xf32> to vector<2x8x1xf32>
    %14 = vector.broadcast %13 : vector<2x8x1xf32> to vector<2x8x32xf32>
    %15 = arith.mulf %14, %0 : vector<2x8x32xf32>
    %cst_6 = arith.constant dense<0.000000e+00> : vector<2x32xf32>
    %16 = vector.multi_reduction <add>, %15, %cst_6 [1] : vector<2x8x32xf32> to vector<2x32xf32>
    %17 = vector.broadcast %12 : vector<2x1xf32> to vector<2x32xf32>
    %18 = arith.divf %16, %17 : vector<2x32xf32>
    %c0_7 = arith.constant 0 : index
    %c0_8 = arith.constant 0 : index
    %19 = vector.load %arg3[%c0_7, %c0_8] : memref<32x32xf32, #tpu.memory_space<vmem>>, vector<32x32xf32>
    %cst_9 = arith.constant dense<0.000000e+00> : vector<2x32xf32>
    %20 = tpu.matmul %18, %19, %cst_9 {dimension_numbers = #tpu.dot_dimension_numbers<[1], [0], [0], [1], [0, 0, 1, 1], [], []>} : vector<2x32xf32>, vector<32x32xf32>, vector<2x32xf32> -> vector<2x32xf32>
    %c0_10 = arith.constant 0 : index
    %c0_11 = arith.constant 0 : index
    %21 = vector.load %arg4[%c0_10, %c0_11] : memref<1x32xf32, #tpu.memory_space<vmem>>, vector<1x32xf32>
    %22 = vector.broadcast %21 : vector<1x32xf32> to vector<2x32xf32>
    %23 = arith.addf %20, %22 : vector<2x32xf32>
    %c0_12 = arith.constant 0 : index
    %c0_13 = arith.constant 0 : index
    %24 = vector.load %arg5[%c0_12, %c0_13] : memref<2x32xf32, #tpu.memory_space<vmem>>, vector<2x32xf32>
    tpu.vector_store %arg5[%c0_12, %c0_13], %23 {strides = array<i32>} : memref<2x32xf32, #tpu.memory_space<vmem>>, vector<2x32xf32>,
    return
  }
  func.func @transform_0(%arg0: i32) -> (i32, i32, i32) {
    %c0_i32 = arith.constant 0 : i32
    %c0_i32_0 = arith.constant 0 : i32
    %c0_i32_1 = arith.constant 0 : i32
    return %arg0, %c0_i32, %c0_i32_0 : i32, i32, i32
  }
  func.func @transform_1(%arg0: i32) -> (i32, i32) {
    %c0_i32 = arith.constant 0 : i32
    %c0_i32_0 = arith.constant 0 : i32
    %c0_i32_1 = arith.constant 0 : i32
    return %c0_i32, %c0_i32_0 : i32, i32
  }
  func.func @transform_2(%arg0: i32) -> (i32, i32) {
    %c0_i32 = arith.constant 0 : i32
    %c0_i32_0 = arith.constant 0 : i32
    %c0_i32_1 = arith.constant 0 : i32
    return %c0_i32, %c0_i32_0 : i32, i32
  }
  func.func @transform_3(%arg0: i32) -> (i32, i32) {
    %c0_i32 = arith.constant 0 : i32
    %c0_i32_0 = arith.constant 0 : i32
    %c0_i32_1 = arith.constant 0 : i32
    return %c0_i32, %c0_i32_0 : i32, i32
  }
  func.func @transform_4(%arg0: i32) -> (i32, i32) {
    %c0_i32 = arith.constant 0 : i32
    %c0_i32_0 = arith.constant 0 : i32
    return %arg0, %c0_i32 : i32, i32
  }
}

</mosaic_0001>

<bundles_post_ra>
// kernel: tpu_custom_call.1
= control target key start
LH: loop header
LB: loop body
LE: loop exit
PB: predicated region body
PF: predicated region fallthrough
CT: control target
= control target key end

     0   :  { %9 = vsyncpa [#allocation3], 0  ;;  %s458_s0 = inlined_call_operand.hbm [shape: f32[2,8,32], index: 0, kind: input, shape index: {}]   ;;  %s459_s1 = inlined_call_operand.vmem [shape: f32[1,32], index: 1, kind: input, shape index: {}]   ;;  %s460_s2 = inlined_call_operand.hbm [shape: f32[32,32], index: 2, kind: input, shape index: {}]   ;;  %s461_s3 = inlined_call_operand.vmem [shape: f32[1,32], index: 3, kind: input, shape index: {}]   ;;  %s462_s4 = inlined_call_operand.hbm [shape: f32[2,32], index: 4, kind: output, shape index: {}]  }
   0x1   :  { %10 = vsyncpa [#allocation6], 0 }
   0x2   :  { %11 = vsyncpa [#allocation4], 0  ;;  %s368_s15 = smov [#allocation2]   ;;  %s296_s19 = scalar_lea.hbm %s458_s0, 256 }
   0x3   :  { %s17_s16 = sshll.u32 %s368_s15, 4  ;;  %p297_p0 = scmp.ne.s32.totalorder %s458_s0, %s296_s19  ;;  %s18_s16 = int_to_ptr.vmem [resolvable:$true] %s17_s16 }
   0x4   :  { %p300_p1 = scmp.lt.u32.totalorder %s296_s19, %s458_s0 }
   0x6   :  { %p302_p2 = pnand %p300_p1, %p297_p0 }
   0x8   :  { %305 = shalt.err (!%p302_p2)
}
   0x9   :  { %s306_s24 = scalar_lea.vmem %s18_s16, 256  ;;  %p311_p4 = scmp.lt.s32.totalorder %s18_s16, %s18_s16 }
   0xa   :  { %p307_p3 = scmp.ne.s32.totalorder %s18_s16, %s306_s24  ;;  %p312_p5 = scmp.lt.s32.totalorder %s306_s24, %s306_s24 }
   0xc   :  { %p313_p6 = por %p312_p5, %p311_p4 }
   0xe   :  { %p314_p7 = pnand %p313_p6, %p307_p3 }
  0x10   :  { %317 = shalt.err (!%p314_p7)
}
  0x11   :  { %s369_s25 = smov 128   ;;  %s370_s26 = smov 8  }
  0x12   :  { %23 = dma.hbm_to_vmem [thread:$0]  %s458_s0, 256, %s18_s16, [#allocation3], %s369_s25, %s369_s25, %s370_s26  }
  0x13   :  { %s371_s29 = smov [#allocation5]   ;;  %s318_s7 = scalar_lea.hbm %s460_s2, 512 }
  0x14   :  { %s31_s30 = sshll.u32 %s371_s29, 4  ;;  %p319_p8 = scmp.ne.s32.totalorder %s460_s2, %s318_s7  ;;  %s32_s30 = int_to_ptr.vmem [resolvable:$true] %s31_s30 }
  0x15   :  { %p322_p9 = scmp.lt.u32.totalorder %s318_s7, %s460_s2 }
  0x17   :  { %p324_p10 = pnand %p322_p9, %p319_p8 }
  0x19   :  { %327 = shalt.err (!%p324_p10)
}
  0x1a   :  { %s328_s12 = scalar_lea.vmem %s32_s30, 512  ;;  %p333_p12 = scmp.lt.s32.totalorder %s32_s30, %s32_s30 }
  0x1b   :  { %p329_p11 = scmp.ne.s32.totalorder %s32_s30, %s328_s12  ;;  %p334_p13 = scmp.lt.s32.totalorder %s328_s12, %s328_s12 }
  0x1d   :  { %p335_p0 = por %p334_p13, %p333_p12 }
  0x1f   :  { %p336_p1 = pnand %p335_p0, %p329_p11 }
  0x21   :  { %339 = shalt.err (!%p336_p1)
}
  0x22   :  { %37 = dma.hbm_to_vmem [thread:$0]  %s460_s2, 512, %s32_s30, [#allocation6], %s369_s25, %s369_s25, %s370_s26  }
  0x23   :  { %362 = dma.done.wait [#allocation3], 256  }
  0x24   :  { %363 = vsyncadd [#allocation3], 4294967040 }
  0x25   :  { %364 = dma.done.wait [#allocation6], 512  }
  0x26   :  { %365 = vsyncadd [#allocation6], 4294966784  ;;  %v426_v0 = vld [vmem:[#allocation2] sm:$0xff]  ;;  %vm57_vm0 = vcmask 261120   ;;  %v47_v2 = vld [vmem:[#allocation2 + $0x8] sm:$0xff]  ;;  %v66_v7 = vlaneseq  ;;  %vm76_vm1 = vcmask 1041409  }
  0x27   :  { %v252_v1 = vld [vmem:[%s459_s1] ss:$0 sm:$0xff]  ;;  %vm79_vm2 = vcmask 58368   ;;  %v372_v17 = vmov 0   ;;  %v147_v35 = vld [vmem:[#allocation5] sm:$0xff]  ;;  %v148_v36 = vld [vmem:[#allocation5 + $0x8] sm:$0xff] }
  0x28   :  { %v55_v3 = vmul.f32 %v252_v1, %v426_v0  ;;  %v56_v4 = vmul.f32 %v252_v1, %v47_v2  ;;  %v67_v8 = vand.u32 127, %v66_v7  ;;  %v69_v9 = vshrl.u32 %v66_v7, 7  ;;  %287 = vset.pattern.permute.xlu0 %v372_v17  ;;  %286 = vset.pattern.permute.xlu1 %v372_v17  ;;  %v149_v37 = vld [vmem:[#allocation5 + $0x10] sm:$0xff]  ;;  %v150_v40 = vld [vmem:[#allocation5 + $0x18] sm:$0xff]  ;;  %s376_s16 = smov [#allocation7]  }
  0x29   :  { %v373_v38 = vmov 0.0|0.0   ;;  %v272_v39 = vpack.c.bf16 %v148_v36, %v147_v35  ;;  %vm374_vm3 = vmmov 0   ;;  %v375_v41 = vmov 0.0   ;;  %s242_s17 = sshll.u32 %s376_s16, 4  ;;  %s243_s17 = int_to_ptr.vmem [resolvable:$true] %s242_s17 }
  0x2a   :  { %v58_v5 = vsel %vm57_vm0, %v55_v3, 0.0  ;;  %v61_v6 = vsel %vm57_vm0, %v56_v4, 0.0  ;;  %v70_v11 = vsub.s32 %v67_v8, %v69_v9  ;;  %v86_v18 = vsub.s32 0, %v69_v9  ;;  %271 = vmatprep.subr.bf16.mxu0 %v373_v38  ;;  %268 = vmatprep.mubr.msk.f32.mxu0 %vm374_vm3, %v375_v41  ;;  %v253_v3 = vld [vmem:[%s461_s3] ss:$0 sm:$0xff]  ;;  %s340_s18 = scalar_lea.vmem %s243_s17, 32  ;;  %p345_p3 = scmp.lt.s32.totalorder %s243_s17, %s243_s17 }
  0x2b   :  { %59 = vadd.xlane.f32.xlu0 %v58_v5  ;;  %v90_v19 = vsub.s32 1, %v69_v9  ;;  %273 = vmatpush3.bf16.msra.mxu0 %v272_v39  ;;  %v275_v42 = vpack.c.bf16 %v150_v40, %v149_v37  ;;  %vm234_vm4 = vcmask 254976   ;;  %p341_p2 = scmp.ne.s32.totalorder %s243_s17, %s340_s18  ;;  %p346_p4 = scmp.lt.s32.totalorder %s340_s18, %s340_s18 }
  0x2c   :  { %274 = vmatprep.subr.bf16.mxu0 %v373_v38 }
  0x2d   :  { %p347_p5 = por %p346_p4, %p345_p3 }
  0x2f   :  { %62 = vadd.xlane.f32.xlu0 %v61_v6  ;;  %276 = vmatpush3.bf16.msra.mxu0 %v275_v42  ;;  %p348_p6 = pnand %p347_p5, %p341_p2 }
  0xb8   :  { %v60_v10 = vpop.xlane.xlu0 %59 }
  0xb9   :  { %v71_v13 = vrot.slane %v60_v10, %v70_v11 }
  0xbc   :  { %v63_v12 = vpop.xlane.xlu0 %62 }
  0xbd   :  { %v75_v14 = vrot.slane %v63_v12, %v70_v11 }
  0xbf   :  { %v77_v15 = vsel %vm76_vm1, %v75_v14, %v71_v13 }
  0xc0   :  { %v80_v16 = vsel %vm79_vm2, %v77_v15, -inf }
  0xc1   :  { %81 = vmax.xlane.f32.xlu1 %v80_v16 }
 0x14e   :  { %v82_v20 = vpop.xlane.xlu1 %81 }
 0x14f   :  { %v87_v21 = vrot.slane %v82_v20, %v86_v18  ;;  %v91_v22 = vrot.slane %v82_v20, %v90_v19 }
 0x151   :  { %v94_v23 = vsub.f32 %v60_v10, %v87_v21  ;;  %v95_v24 = vsub.f32 %v63_v12, %v91_v22 }
 0x153   :  { %v96_v25 = vmul.f32 1.442695, %v94_v23  ;;  %v98_v26 = vmul.f32 1.442695, %v95_v24 }
 0x155   :  { %288 = vpow2.f32 %v96_v25 }
 0x156   :  { %290 = vpow2.f32 %v98_v26 }
 0x15f   :  { %v289_v27 = vpop.eup %288 }
 0x160   :  { %v291_v28 = vpop.eup %290  ;;  %103 = vperm.xlu1 %286, %v289_v27  }
 0x161   :  { %106 = vperm.xlu0 %287, %v291_v28  }
 0x1df   :  { %v104_v29 = vpop.permute.xlu1 %103 }
 0x1e0   :  { %v107_v30 = vpop.permute.xlu0 %106  ;;  %v111_v31 = vrot.slane %v104_v29, %v70_v11  ;;  %v123_v44 = vmul.f32 %v104_v29, %v426_v0 }
 0x1e1   :  { %v115_v32 = vrot.slane %v107_v30, %v70_v11  ;;  %v124_v43 = vmul.f32 %v107_v30, %v47_v2 }
 0x1e2   :  { %v125_v46 = vsel %vm57_vm0, %v123_v44, 0.0 }
 0x1e3   :  { %v116_v33 = vsel %vm76_vm1, %v115_v32, %v111_v31  ;;  %v132_v45 = vsel %vm57_vm0, %v124_v43, 0.0  ;;  %v126_v48 = vrot.slane %v125_v46, 4 }
 0x1e4   :  { %v118_v34 = vsel %vm79_vm2, %v116_v33, 0.0  ;;  %v133_v47 = vrot.slane %v132_v45, 4 }
 0x1e5   :  { %119 = vadd.xlane.f32.xlu1 %v118_v34  ;;  %v127_v50 = vadd.f32 %v126_v48, %v125_v46 }
 0x1e6   :  { %v134_v49 = vadd.f32 %v133_v47, %v132_v45 }
 0x1e7   :  { %v128_v54 = vrot.slane %v127_v50, 2 }
 0x1e8   :  { %v135_v51 = vrot.slane %v134_v49, 2 }
 0x1e9   :  { %v129_v56 = vadd.f32 %v128_v54, %v127_v50 }
 0x1ea   :  { %v136_v55 = vadd.f32 %v135_v51, %v134_v49 }
 0x1eb   :  { %v130_v58 = vrot.slane %v129_v56, 1 }
 0x1ec   :  { %v137_v57 = vrot.slane %v136_v55, 1 }
 0x1ed   :  { %v131_v62 = vadd.f32 %v130_v58, %v129_v56 }
 0x1ee   :  { %v138_v60 = vadd.f32 %v137_v57, %v136_v55 }
 0x272   :  { %v120_v52 = vpop.xlane.xlu1 %119 }
 0x273   :  { %v140_v53 = vrot.slane %v120_v52, 1  ;;  %292 = vrcp.f32 %v120_v52 }
 0x275   :  { %294 = vrcp.f32 %v140_v53 }
 0x27d   :  { %v293_v59 = vpop.eup %292 }
 0x27e   :  { %v144_v0 = vmul.f32 %v293_v59, %v131_v62 }
 0x27f   :  { %v295_v61 = vpop.eup %294 }
 0x280   :  { %v146_v63 = vmul.f32 %v295_v61, %v138_v60 }
 0x282   :  { %v160_v1 = vrot.slane %v146_v63, 7 }
 0x284   :  { %v161_v2 = vsel %vm76_vm1, %v160_v1, %v144_v0 }
 0x285   :  { %269 = vmatmul.mubr.msk.f32.vlgmr.msra.gmra.mrb[0].mxu0 %vm57_vm0, %v161_v2 }
 0x358   :  { %v230_v4 = vpop.f32.mrb[0].mxu0 }
 0x359   :  { %v231_v5 = vadd.f32 %v253_v3, %v230_v4  ;;  %v270_v6 = vpop.f32.mrb[1].mxu0 }
 0x35b   :  { %235 = vst.msk [vmem:[#allocation7] sm:$0x3] %vm234_vm4, %v231_v5 }
 0x35c   :  { %351 = shalt.err (!%p348_p6)
}
 0x35d   :  { %s352_s21 = scalar_lea.hbm %s462_s4, 32 }
 0x35e   :  { %p353_p7 = scmp.ne.s32.totalorder %s462_s4, %s352_s21  ;;  %p356_p8 = scmp.lt.u32.totalorder %s352_s21, %s462_s4 }
 0x360   :  { %p358_p9 = pnand %p356_p8, %p353_p7 }
 0x362   :  { %361 = shalt.err (!%p358_p9)
}
 0x363   :  { %245 = dma.vmem_to_hbm [thread:$0]  %s243_s17, 32, %s462_s4, [#allocation4]  }
 0x364   :  { %366 = dma.done.wait [#allocation4], 32  }
 0x365   :  { %367 = vsyncadd [#allocation4], 4294967264 }
 0x366   :  { %249 = vsyncpa [#allocation3], 1 }
 0x367   :  { %250 = vsyncpa [#allocation6], 1 }
 0x368   :  { %251 = vsyncpa [#allocation4], 1 }

</bundles_post_ra>
